<compile_context>
chip_gen: v5e
topology: v5e:2x2
jax: 0.10.0
libtpu: 0.0.40
codegen_flags: <defaults>
</compile_context>

<pallas_src>
import functools

import jax
import jax.numpy as jnp
from jax import lax
from jax.experimental import pallas as pl
from jax.experimental.pallas import tpu as pltpu
import numpy as np

_LANE = 128


def _round_up(a, b):
    return (a + b - 1) // b * b


def _hw_params():
    """Generation-aware budgets: (tile_budget, vmem_limit, fused_limit) in bytes."""
    vmem_cap = 64 * 1024 * 1024            # conservative default (v7x per-core VMEM)
    try:
        info = pltpu.get_tpu_info()
        cap = getattr(info, "vmem_capacity_bytes", None)
        if cap:
            vmem_cap = int(cap)
    except Exception:
        pass
    if vmem_cap < 100 * 1024 * 1024:
        # v7x-class: 64 MiB VMEM, ~3.2 TB/s HBM -> larger tiles, tighter scoped limit.
        tile_budget = 6 * 1024 * 1024
        vmem_limit = 40 * 1024 * 1024
    else:
        # v5e / v6e: 128 MiB VMEM.
        tile_budget = 4 * 1024 * 1024
        vmem_limit = 64 * 1024 * 1024
    fused_limit = min(vmem_cap // 12, 8 * 1024 * 1024)
    return tile_budget, vmem_limit, fused_limit


def _choose_hw_tile(HW, C, budget_bytes):
    """Pick (hw_tile, hw_pad) with hw_pad % hw_tile == 0 and hw_pad >= HW.

    No padding when HW is a multiple of 128 (largest multiple-of-128 divisor that
    fits the byte budget) or when a single full-HW block fits the budget (full-dim
    escape hatch of the (8,128) rule).  Padding along HW is a rare fallback.
    """
    bytes_per_lane = max(C, 1) * 4
    max_lanes = max(_LANE, (budget_bytes // bytes_per_lane) // _LANE * _LANE)

    def best_divisor(n):
        cap = min(n, max_lanes)
        best, t = _LANE, _LANE
        while t <= cap:
            if n % t == 0:
                best = t
            t += _LANE
        return best

    if HW % _LANE == 0:
        return best_divisor(HW), HW
    if HW * bytes_per_lane <= budget_bytes:
        return HW, HW                                  # full-HW block, no padding
    hw_pad = _round_up(HW, _LANE)                      # rare fallback: pad HW only
    return best_divisor(hw_pad), hw_pad


# --------------------------------------------------------------------------- #
# Kernels
# --------------------------------------------------------------------------- #

def _fused_kernel(x_ref, gamma_ref, beta_ref, o_ref, *, inv_count, eps):
    """Whole-x-in-VMEM path: exact centered variance, one read + one write of x."""
    x = x_ref[...].astype(jnp.float32)                             # (N, C, HW)
    mean = jnp.sum(x, axis=(0, 2), keepdims=True) * inv_count      # (1, C, 1)
    centered = x - mean
    var = jnp.sum(centered * centered, axis=(0, 2), keepdims=True) * inv_count
    inv_std = lax.rsqrt(var + eps)                                 # (1, C, 1)
    scale = gamma_ref[...].astype(jnp.float32) * inv_std           # (N, C, 1)
    shift = beta_ref[...].astype(jnp.float32) - scale * mean       # (N, C, 1)
    o_ref[...] = (x * scale + shift).astype(o_ref.dtype)


def _stats_kernel(x_ref, k_ref, sum_ref, sq_ref, *, n_slabs, rem):
    """Per-(sample, partial) accumulation of sum / sum-of-squares of (x - k).

    x_ref  : (C, hw_tile) block of one sample
    k_ref  : (C, 1) per-channel pre-shift (mitigates E[x^2]-mean^2 cancellation)
    sum_ref, sq_ref : (C, 128) f32 lane-parallel accumulators, resident across the
                      last (reduction) grid axis.  Accumulation is plain VPU adds
                      per 128-lane slab; the cross-lane reduce happens in the wrapper.
    """
    @pl.when(pl.program_id(2) == 0)
    def _():
        sum_ref[...] = jnp.zeros_like(sum_ref)
        sq_ref[...] = jnp.zeros_like(sq_ref)

    k = k_ref[...].astype(jnp.float32)                             # (C, 1)

    if n_slabs > 0:
        def body(s, carry):
            off = pl.multiple_of(s * _LANE, _LANE)
            xs = x_ref[:, pl.ds(off, _LANE)].astype(jnp.float32) - k
            sum_ref[...] += xs
            sq_ref[...] += xs * xs
            return carry

        lax.fori_loop(0, n_slabs, body, 0, unroll=min(n_slabs, 8))

    if rem > 0:
        # Only for the full-HW (non-lane-aligned) block case; the tail is < 128 wide.
        xs = x_ref[:, pl.ds(n_slabs * _LANE, rem)].astype(jnp.float32) - k
        sum_ref[:, :1] += jnp.sum(xs, axis=1, keepdims=True)
        sq_ref[:, :1] += jnp.sum(xs * xs, axis=1, keepdims=True)


def _norm_kernel(x_ref, scale_ref, shift_ref, o_ref):
    """Fused normalize + conditional affine: one multiply-add per element."""
    x = x_ref[...].astype(jnp.float32)
    o_ref[...] = (x * scale_ref[...] + shift_ref[...]).astype(o_ref.dtype)


# --------------------------------------------------------------------------- #
# Wrapper
# --------------------------------------------------------------------------- #

def conditional_batchnorm2d(x_nchw, y, w_gamma, w_beta, eps=1e-4,
                            force_two_phase=False):
    """x_nchw: (N, C, H, W); y: (N, K); w_gamma / w_beta: (C, K) (nn.Linear.weight)."""
    N, C, H, W = x_nchw.shape
    HW = H * W
    out_dtype = x_nchw.dtype
    tile_budget, vmem_limit, fused_limit = _hw_params()

    x3 = x_nchw.reshape(N, C, HW)                     # contiguous reshape: no copy
    count = float(N * HW)
    inv_count = 1.0 / count

    # Conditional affine params (tiny matmuls, hoisted off the per-tile path).
    y32 = jnp.asarray(y, jnp.float32)
    gamma = y32 @ jnp.asarray(w_gamma, jnp.float32).T + 1.0       # (N, C)
    beta = y32 @ jnp.asarray(w_beta, jnp.float32).T               # (N, C)

    x_f32_bytes = N * C * HW * 4

    if (not force_two_phase) and x_f32_bytes <= fused_limit:
        # ---- Fully fused single kernel: x resident in VMEM (1R + 1W of HBM). ----
        out3 = pl.pallas_call(
            functools.partial(_fused_kernel, inv_count=inv_count, eps=float(eps)),
            out_shape=jax.ShapeDtypeStruct((N, C, HW), out_dtype),
            compiler_params=pltpu.CompilerParams(vmem_limit_bytes=vmem_limit),
        )(x3, gamma[:, :, None], beta[:, :, None])
        return out3.reshape(N, C, H, W)

    # ---- Two-phase, tiled path ----
    hw_tile, hw_pad = _choose_hw_tile(HW, C, tile_budget)
    n_slabs, rem = hw_tile // _LANE, hw_tile % _LANE

    if hw_pad != HW:
        # Rare fallback (HW not lane-aligned AND full-HW block over budget).
        # Zero padding is stats-safe only with k == 0, so disable the pre-shift.
        x3 = jnp.pad(x3, ((0, 0), (0, 0), (0, hw_pad - HW)))
        k = jnp.zeros((C, 1), jnp.float32)
    else:
        # Per-channel pre-shift (first spatial value of sample 0) keeps the
        # E[(x-k)^2] - E[x-k]^2 variance well-conditioned when |mean| >> std.
        k = x3[0, :, :1].astype(jnp.float32)                      # (C, 1)

    J_total = hw_pad // hw_tile
    if J_total % 2 == 0 and J_total >= 2:
        P, J = 2, J_total // 2   # second parallel axis: keeps both v7x TCs busy for small N
    else:
        P, J = 1, J_total

    def x_stats_map(i, p, j):
        return (i, 0, p * J + j)

    def k_map(i, p, j):
        return (0, 0)

    def acc_map(i, p, j):
        return (i * P + p, 0, 0)

    # Phase 1: per-(sample, partial) sums, one pass over x, lane-dense accumulators.
    sum_np, sq_np = pl.pallas_call(
        functools.partial(_stats_kernel, n_slabs=n_slabs, rem=rem),
        out_shape=(jax.ShapeDtypeStruct((N * P, C, _LANE), jnp.float32),
                   jax.ShapeDtypeStruct((N * P, C, _LANE), jnp.float32)),
        grid=(N, P, J),
        in_specs=[pl.BlockSpec((None, C, hw_tile), x_stats_map),
                  pl.BlockSpec((C, 1), k_map)],
        out_specs=(pl.BlockSpec((None, C, _LANE), acc_map),
                   pl.BlockSpec((None, C, _LANE), acc_map)),
        compiler_params=pltpu.CompilerParams(
            dimension_semantics=("parallel", "parallel", "arbitrary"),
            vmem_limit_bytes=vmem_limit),
    )(x3, k)

    # Tiny per-channel / per-sample math (wrapper-side, off the per-tile path).
    s_c = jnp.sum(sum_np, axis=(0, 2))                            # (C,)  E-sum of (x-k)
    q_c = jnp.sum(sq_np, axis=(0, 2))                             # (C,)
    mean_s = s_c * inv_count
    var = jnp.maximum(q_c * inv_count - mean_s * mean_s, 0.0)     # shift-invariant
    mean = mean_s + k[:, 0]
    inv_std = lax.rsqrt(var + jnp.float32(eps))

    scale = gamma * inv_std[None, :]                              # (N, C)
    shift = beta - scale * mean[None, :]                          # (N, C)

    # Phase 2: out = x * scale + shift, lane-dense tiles, fully parallel grid.
    out3 = pl.pallas_call(
        _norm_kernel,
        out_shape=jax.ShapeDtypeStruct((N, C, hw_pad), out_dtype),
        grid=(N, J_total),
        in_specs=[pl.BlockSpec((None, C, hw_tile), lambda i, j: (i, 0, j)),
                  pl.BlockSpec((None, C, 1), lambda i, j: (i, 0, 0)),
                  pl.BlockSpec((None, C, 1), lambda i, j: (i, 0, 0))],
        out_specs=pl.BlockSpec((None, C, hw_tile), lambda i, j: (i, 0, j)),
        compiler_params=pltpu.CompilerParams(
            dimension_semantics=("parallel", "parallel"),
            vmem_limit_bytes=vmem_limit),
    )(x3, scale[:, :, None], shift[:, :, None])

    if hw_pad != HW:
        out3 = out3[:, :, :HW]
    return out3.reshape(N, C, H, W)


def _reference(x, y, w_gamma, w_beta, eps=1e-4):
    # Pure-JAX reference mirroring the PyTorch forward (training-mode BN).
    mean = jnp.mean(x, axis=(0, 2, 3), keepdims=True)
    var = jnp.mean((x - mean) ** 2, axis=(0, 2, 3), keepdims=True)
    xn = (x - mean) / jnp.sqrt(var + eps)
    gamma = y @ w_gamma.T + 1.0
    beta = y @ w_beta.T
    return gamma[:, :, None, None] * xn + beta[:, :, None, None]


if __name__ == "__main__":
    num_features = 4   # C
    num_classes = 8    # K
    N, H, W = 2, 16, 16

    key = jax.random.PRNGKey(0)
    kx, ky, kg, kb = jax.random.split(key, 4)

    x = jax.random.normal(kx, (N, num_features, H, W), dtype=jnp.float32)
    y = jax.random.normal(ky, (N, num_classes), dtype=jnp.float32)
    bound = 1.0 / np.sqrt(num_classes)
    w_gamma = jax.random.uniform(kg, (num_features, num_classes),
                                 minval=-bound, maxval=bound, dtype=jnp.float32)
    w_beta = jax.random.uniform(kb, (num_features, num_classes),
                                minval=-bound, maxval=bound, dtype=jnp.float32)

    # Main case (matches the PyTorch module at small shapes): fused VMEM-resident path.
    out = jax.block_until_ready(conditional_batchnorm2d(x, y, w_gamma, w_beta, eps=1e-4))
    ref = _reference(x, y, w_gamma, w_beta, eps=1e-4)
    np.testing.assert_allclose(np.asarray(out), np.asarray(ref), rtol=1e-4, atol=1e-4)

    # Exercise the tiled two-phase path (lane-aligned HW, multi-tile, P split,
    # non-zero mean to validate the pre-shifted variance).
    xb = jax.random.normal(kg, (1, 8, 512, 512), dtype=jnp.float32) * 0.5 + 3.0
    yb = jax.random.normal(ky, (1, num_classes), dtype=jnp.float32)
    wgb = jax.random.uniform(kg, (8, num_classes), minval=-bound, maxval=bound)
    wbb = jax.random.uniform(kb, (8, num_classes), minval=-bound, maxval=bound)
    outb = jax.block_until_ready(
        conditional_batchnorm2d(xb, yb, wgb, wbb, eps=1e-4, force_two_phase=True))
    refb = _reference(xb, yb, wgb, wbb, eps=1e-4)
    np.testing.assert_allclose(np.asarray(outb), np.asarray(refb), rtol=1e-4, atol=1e-4)

    # Exercise the full-HW (non-lane-aligned) two-phase path, no padding copies.
    xc = jax.random.normal(kb, (3, num_features, 12, 12), dtype=jnp.float32)
    yc = jax.random.normal(ky, (3, num_classes), dtype=jnp.float32)
    outc = jax.block_until_ready(
        conditional_batchnorm2d(xc, yc, w_gamma, w_beta, eps=1e-4, force_two_phase=True))
    refc = _reference(xc, yc, w_gamma, w_beta, eps=1e-4)
    np.testing.assert_allclose(np.asarray(outc), np.asarray(refc), rtol=1e-4, atol=1e-4)

    print("KERNEL_OK")
</pallas_src>

<mosaic_0001>
module attributes {stable_mosaic.version = 11 : i64} {
  func.func @_fused_kernel(%arg0: memref<2x4x256xf32, #tpu.memory_space<vmem>>, %arg1: memref<2x4x1xf32, #tpu.memory_space<vmem>>, %arg2: memref<2x4x1xf32, #tpu.memory_space<vmem>>, %arg3: memref<2x4x256xf32, #tpu.memory_space<vmem>>) attributes {dimension_semantics = [], scalar_prefetch = 0 : i64, scratch_operands = 0 : i64, tpu.core_type = #tpu.core_type<tc>} {
    %c0 = arith.constant 0 : index
    %c0_0 = arith.constant 0 : index
    %c0_1 = arith.constant 0 : index
    %0 = vector.load %arg0[%c0, %c0_0, %c0_1] : memref<2x4x256xf32, #tpu.memory_space<vmem>>, vector<2x4x256xf32>
    %cst = arith.constant dense<0.000000e+00> : vector<4xf32>
    %1 = vector.multi_reduction <add>, %0, %cst [0, 2] : vector<2x4x256xf32> to vector<4xf32>
    %2 = vector.shape_cast %1 : vector<4xf32> to vector<1x4x1xf32>
    %cst_2 = arith.constant 0.001953125 : f32
    %3 = vector.broadcast %cst_2 : f32 to vector<1x4x1xf32>
    %4 = arith.mulf %2, %3 : vector<1x4x1xf32>
    %5 = vector.broadcast %4 : vector<1x4x1xf32> to vector<2x4x256xf32>
    %6 = arith.subf %0, %5 : vector<2x4x256xf32>
    %7 = arith.mulf %6, %6 : vector<2x4x256xf32>
    %cst_3 = arith.constant dense<0.000000e+00> : vector<4xf32>
    %8 = vector.multi_reduction <add>, %7, %cst_3 [0, 2] : vector<2x4x256xf32> to vector<4xf32>
    %9 = vector.shape_cast %8 : vector<4xf32> to vector<1x4x1xf32>
    %cst_4 = arith.constant 0.001953125 : f32
    %10 = vector.broadcast %cst_4 : f32 to vector<1x4x1xf32>
    %11 = arith.mulf %9, %10 : vector<1x4x1xf32>
    %cst_5 = arith.constant 9.99999974E-5 : f32
    %12 = vector.broadcast %cst_5 : f32 to vector<1x4x1xf32>
    %13 = arith.addf %11, %12 : vector<1x4x1xf32>
    %14 = math.rsqrt %13 : vector<1x4x1xf32>
    %c0_6 = arith.constant 0 : index
    %c0_7 = arith.constant 0 : index
    %c0_8 = arith.constant 0 : index
    %15 = vector.load %arg1[%c0_6, %c0_7, %c0_8] : memref<2x4x1xf32, #tpu.memory_space<vmem>>, vector<2x4x1xf32>
    %16 = vector.broadcast %14 : vector<1x4x1xf32> to vector<2x4x1xf32>
    %17 = arith.mulf %15, %16 : vector<2x4x1xf32>
    %c0_9 = arith.constant 0 : index
    %c0_10 = arith.constant 0 : index
    %c0_11 = arith.constant 0 : index
    %18 = vector.load %arg2[%c0_9, %c0_10, %c0_11] : memref<2x4x1xf32, #tpu.memory_space<vmem>>, vector<2x4x1xf32>
    %19 = vector.broadcast %4 : vector<1x4x1xf32> to vector<2x4x1xf32>
    %20 = arith.mulf %17, %19 : vector<2x4x1xf32>
    %21 = arith.subf %18, %20 : vector<2x4x1xf32>
    %22 = vector.broadcast %17 : vector<2x4x1xf32> to vector<2x4x256xf32>
    %23 = arith.mulf %0, %22 : vector<2x4x256xf32>
    %24 = vector.broadcast %21 : vector<2x4x1xf32> to vector<2x4x256xf32>
    %25 = arith.addf %23, %24 : vector<2x4x256xf32>
    %c0_12 = arith.constant 0 : index
    %c0_13 = arith.constant 0 : index
    %c0_14 = arith.constant 0 : index
    %26 = vector.load %arg3[%c0_12, %c0_13, %c0_14] : memref<2x4x256xf32, #tpu.memory_space<vmem>>, vector<2x4x256xf32>
    tpu.vector_store %arg3[%c0_12, %c0_13, %c0_14], %25 {strides = array<i32>} : memref<2x4x256xf32, #tpu.memory_space<vmem>>, vector<2x4x256xf32>,
    return
  }
}

</mosaic_0001>

<bundles_post_ra>
// kernel: tpu_custom_call.1
= control target key start
LH: loop header
LB: loop body
LE: loop exit
PB: predicated region body
PF: predicated region fallthrough
CT: control target
= control target key end

     0   :  { %s262_s0 = inlined_call_operand.vmem [shape: f32[2,4,256], index: 0, kind: input, shape index: {}]   ;;  %s263_s1 = inlined_call_operand.vmem [shape: f32[2,4,1], index: 1, kind: input, shape index: {}]   ;;  %s264_s2 = inlined_call_operand.vmem [shape: f32[2,4,1], index: 2, kind: input, shape index: {}]   ;;  %s265_s3 = inlined_call_operand.hbm [shape: f32[2,4,256], index: 3, kind: output, shape index: {}]  }
   0x1   :  { %v219_v0 = vld [vmem:[%s262_s0] sm:$0xff]  ;;  %v224_v1 = vld [vmem:[%s262_s0 + $0x8] sm:$0xff] }
   0x2   :  { %19 = vst [vmem:[#allocation1] ss:$2 sm:$0xff] %v219_v0 }
   0x3   :  { %8 = vsyncpa [#allocation3], 0  ;;  %23 = vst [vmem:[#allocation1 + $0x10] ss:$2 sm:$0xff] %v224_v1  ;;  %vm30_vm0 = vcmask 1043456   ;;  %v192_v34 = vmov 0  }
   0x4   :  { %v191_v13 = vmov 839922192   ;;  %160 = vset.pattern.permute.xlu1 %v192_v34  ;;  %161 = vset.pattern.permute.xlu2 %v192_v34  ;;  %v85_v44 = vld [vmem:[%s263_s1] sm:$0xf]  ;;  %v86_v47 = vld [vmem:[%s263_s1 + $0x4] sm:$0xf] }
   0x5   :  { %v43_v14 = vunpack.c.l.s4 %v191_v13  ;;  %162 = vset.pattern.permute.xlu0 %v192_v34  ;;  %v89_v48 = vld [vmem:[%s264_s2] sm:$0xf]  ;;  %v90_v53 = vld [vmem:[%s264_s2 + $0x4] sm:$0xf]  ;;  %s193_s1 = smov [#allocation2]   ;;  %s143_s25 = sshll.u32 %s265_s3, 4  ;;  %s144_s25 = int_to_ptr.hbm [resolvable:$true] %s143_s25 }
   0x6   :  { %s141_s23 = sshll.u32 %s193_s1, 4  ;;  %s194_s26 = smov 128   ;;  %s142_s23 = int_to_ptr.vmem [resolvable:$true] %s141_s23 }
   0x7   :  { %v232_v15 = vunpack.c.0.s8 %v43_v14  ;;  %s195_s27 = smov 8  }
   0x9   :  { %v20_v2 = vld.sshfl [vmem:[#allocation1] sm:$0xff pattern:$0x75316420]  ;;  %v21_v3 = vld.sshfl [vmem:[#allocation1 + $0x8] sm:$0xff pattern:$0x75316420] }
   0xa   :  { %v24_v4 = vld.sshfl [vmem:[#allocation1 + $0x10] sm:$0xff pattern:$0x75316420]  ;;  %v25_v5 = vld.sshfl [vmem:[#allocation1 + $0x18] sm:$0xff pattern:$0x75316420] }
   0xb   :  { %v31_v6 = vsel %vm30_vm0, %v20_v2, 0.0  ;;  %v32_v7 = vsel %vm30_vm0, %v21_v3, 0.0  ;;  %v34_v8 = vsel %vm30_vm0, %v24_v4, 0.0  ;;  %v36_v10 = vsel %vm30_vm0, %v25_v5, 0.0 }
   0xc   :  { %v33_v9 = vadd.f32 %v32_v7, %v31_v6 }
   0xe   :  { %v35_v11 = vadd.f32 %v34_v8, %v33_v9 }
  0x10   :  { %v37_v12 = vadd.f32 %v36_v10, %v35_v11 }
  0x12   :  { %38 = vadd.xlane.f32.xlu0 %v37_v12 }
  0x85   :  { %v39_v16 = vpop.xlane.xlu0 %38 }
  0x86   :  { %v40_v17 = vmul.f32 0.001953125, %v39_v16 }
  0x88   :  { %v45_v18 = vperm.slane %v40_v17, %v232_v15 }
  0x8a   :  { %v47_v19 = vsub.f32 %v219_v0, %v45_v18  ;;  %v48_v20 = vsub.f32 %v224_v1, %v45_v18 }
  0x8c   :  { %v49_v21 = vmul.f32 %v47_v19, %v47_v19  ;;  %v50_v22 = vmul.f32 %v48_v20, %v48_v20 }
  0x8e   :  { %53 = vst [vmem:[#allocation1] ss:$2 sm:$0xff] %v49_v21 }
  0x8f   :  { %57 = vst [vmem:[#allocation1 + $0x10] ss:$2 sm:$0xff] %v50_v22 }
  0x95   :  { %v54_v23 = vld.sshfl [vmem:[#allocation1] sm:$0xff pattern:$0x75316420]  ;;  %v55_v24 = vld.sshfl [vmem:[#allocation1 + $0x8] sm:$0xff pattern:$0x75316420] }
  0x96   :  { %v58_v25 = vld.sshfl [vmem:[#allocation1 + $0x10] sm:$0xff pattern:$0x75316420]  ;;  %v64_v26 = vsel %vm30_vm0, %v54_v23, 0.0  ;;  %v65_v27 = vsel %vm30_vm0, %v55_v24, 0.0 }
  0x97   :  { %v59_v28 = vld.sshfl [vmem:[#allocation1 + $0x18] sm:$0xff pattern:$0x75316420]  ;;  %v66_v29 = vadd.f32 %v65_v27, %v64_v26  ;;  %v67_v30 = vsel %vm30_vm0, %v58_v25, 0.0 }
  0x98   :  { %v69_v32 = vsel %vm30_vm0, %v59_v28, 0.0 }
  0x99   :  { %v68_v31 = vadd.f32 %v67_v30, %v66_v29 }
  0x9b   :  { %v70_v33 = vadd.f32 %v69_v32, %v68_v31 }
  0x9d   :  { %71 = vadd.xlane.f32.xlu0 %v70_v33 }
 0x110   :  { %v72_v35 = vpop.xlane.xlu0 %71 }
 0x111   :  { %v73_v36 = vmul.f32 0.001953125, %v72_v35 }
 0x113   :  { %v74_v37 = vadd.f32 0.0001, %v73_v36 }
 0x115   :  { %163 = vrsqrt.f32 %v74_v37  ;;  %vm81_vm2 = vweird.f32 %v74_v37 }
 0x11b   :  { %v164_v38 = vpop.eup %163 }
 0x11c   :  { %v76_v39 = vmul.f32 %v164_v38, %v74_v37  ;;  %vm82_vm1 = vweird.f32 %v164_v38 }
 0x11d   :  { %vm83_vm3 = vmor %vm81_vm2, %vm82_vm1 }
 0x11e   :  { %v77_v40 = vmul.f32 %v164_v38, %v76_v39 }
 0x120   :  { %v78_v41 = vmul.f32 0.5, %v77_v40 }
 0x122   :  { %v79_v42 = vsub.f32 1.5, %v78_v41 }
 0x124   :  { %v80_v43 = vmul.f32 %v164_v38, %v79_v42 }
 0x126   :  { %v84_v45 = vsel %vm83_vm3, %v164_v38, %v80_v43 }
 0x127   :  { %v87_v46 = vmul.f32 %v85_v44, %v84_v45  ;;  %v88_v50 = vmul.f32 %v86_v47, %v84_v45 }
 0x129   :  { %97 = vperm.xlu1 %160, %v87_v46   ;;  %v91_v49 = vmul.f32 %v87_v46, %v40_v17  ;;  %v92_v52 = vmul.f32 %v88_v50, %v40_v17 }
 0x12b   :  { %v93_v51 = vsub.f32 %v89_v48, %v91_v49  ;;  %v94_v54 = vsub.f32 %v90_v53, %v92_v52 }
 0x12d   :  { %117 = vperm.xlu2 %161, %v93_v51  }
 0x131   :  { %101 = vperm.xlu1 %160, %v88_v50  }
 0x135   :  { %121 = vperm.xlu2 %161, %v94_v54  }
 0x187   :  { %v118_v55 = vpop.permute.xlu2 %117 }
 0x188   :  { %v126_v58 = vperm.slane %v118_v55, %v232_v15 }
 0x18f   :  { %v122_v61 = vpop.permute.xlu2 %121 }
 0x190   :  { %v130_v2 = vperm.slane %v122_v61, %v232_v15 }
 0x19b   :  { %v98_v56 = vpop.permute.xlu1 %97 }
 0x19c   :  { %v106_v57 = vperm.slane %v98_v56, %v232_v15 }
 0x19e   :  { %v113_v59 = vmul.f32 %v106_v57, %v219_v0 }
 0x1a0   :  { %v133_v60 = vadd.f32 %v126_v58, %v113_v59 }
 0x1a2   :  { %135 = vst [vmem:[#allocation2] sm:$0xff] %v133_v60 }
 0x1a3   :  { %v102_v62 = vpop.permute.xlu1 %101 }
 0x1a4   :  { %v110_v63 = vperm.slane %v102_v62, %v232_v15 }
 0x1a6   :  { %v114_v3 = vmul.f32 %v110_v63, %v224_v1 }
 0x1a8   :  { %v134_v4 = vadd.f32 %v130_v2, %v114_v3 }
 0x1aa   :  { %136 = vst [vmem:[#allocation2 + $0x8] sm:$0xff] %v134_v4 }
 0x1ab   :  { %149 = dma.vmem_to_hbm [thread:$0]  %s142_s23, 256, %s144_s25, [#allocation3], %s194_s26, %s194_s26, %s195_s27  }
 0x1ac   :  { %189 = dma.done.wait [#allocation3], 256  }
 0x1ad   :  { %190 = vsyncadd [#allocation3], 4294967040 }
 0x1ae   :  { %154 = vsyncpa [#allocation3], 1 }

</bundles_post_ra>
